<compile_context>
chip_gen: v5e
topology: v5e:2x2
jax: 0.10.0
libtpu: 0.0.40
codegen_flags: <defaults>
</compile_context>

<pallas_src>
import math

import jax
import jax.numpy as jnp
from jax import lax
from jax.experimental import pallas as pl
from jax.experimental.pallas import tpu as pltpu


# ------------------------------ tiling helpers --------------------------------


def _pick_lane_tile(dim):
    """Tile for a lane (last) dim: a 128-multiple divisor of `dim`, else full dim
    (a full-extent block is always layout-legal)."""
    for c in (512, 256, 128):
        if dim % c == 0:
            return c
    return dim


def _pick_sublane_tile(dim, cap=512):
    """Tile for a sublane (second-to-last) dim: an 8-multiple divisor, else full."""
    for c in (512, 256, 128, 64, 32, 16, 8):
        if c <= cap and dim % c == 0:
            return c
    return dim


def _vmem_limit(block_bytes, scratch_bytes=0):
    """Scoped-VMEM request: double-buffered blocks + scratch + margin.
    Capped at v7x's 64 MiB physical VMEM (v5e/v6e have 128 MiB, so safe)."""
    need = 2 * block_bytes + scratch_bytes + (4 << 20)
    return int(max(16 << 20, min(64 << 20, need)))


# ------------------------------- tiled linear ---------------------------------


def _linear_kernel(x_ref, w_ref, b_ref, o_ref, acc_ref):
    @pl.when(pl.program_id(2) == 0)
    def _():
        acc_ref[...] = jnp.zeros_like(acc_ref)

    acc_ref[...] += jnp.dot(x_ref[...], w_ref[...],
                            preferred_element_type=jnp.float32)

    @pl.when(pl.program_id(2) == pl.num_programs(2) - 1)
    def _():
        o_ref[...] = (acc_ref[...] + b_ref[...]).astype(o_ref.dtype)


def linear(x2d, w, b, *, mxu_dtype=None):
    """y = x2d @ w + b.  `w` is (Cin, Cout); bias stays f32 (added to f32 acc)."""
    M, Cin = x2d.shape
    Cout = w.shape[1]
    tm = _pick_sublane_tile(M)
    tn = _pick_lane_tile(Cout)
    tk = _pick_lane_tile(Cin)
    grid = (M // tm, Cout // tn, Cin // tk)

    if mxu_dtype is not None:
        x2d = x2d.astype(mxu_dtype)
        w = w.astype(mxu_dtype)
    b = b.astype(jnp.float32).reshape(1, Cout)

    isz = x2d.dtype.itemsize
    blk_bytes = tm * tk * isz + tk * tn * isz + tn * 4 + tm * tn * 4
    params = pltpu.CompilerParams(
        dimension_semantics=("parallel", "parallel", "arbitrary"),
        vmem_limit_bytes=_vmem_limit(blk_bytes, scratch_bytes=tm * tn * 4),
    )

    return pl.pallas_call(
        _linear_kernel,
        grid=grid,
        in_specs=[
            pl.BlockSpec((tm, tk), lambda i, j, k: (i, k)),
            pl.BlockSpec((tk, tn), lambda i, j, k: (k, j)),
            pl.BlockSpec((1, tn), lambda i, j, k: (0, j)),
        ],
        out_specs=pl.BlockSpec((tm, tn), lambda i, j, k: (i, j)),
        out_shape=jax.ShapeDtypeStruct((M, Cout), jnp.float32),
        scratch_shapes=[pltpu.VMEM((tm, tn), jnp.float32)],
        compiler_params=params,
    )(x2d, w, b)


# ------------------------------ attention kernel -------------------------------


def _make_attn_kernel(dim_head):
    inv_sqrt_d = 1.0 / math.sqrt(dim_head)

    def attn_kernel(q_ref, k_ref, mask_ref, pad_ref, out_ref, sc_ref):
        # q_ref: (tq, D)  k_ref: (S, D)  mask_ref: (tq, S)  pad_ref: (1, S)
        # out_ref: (tq, D)  sc_ref: (tq, S)
        q = q_ref[...] * inv_sqrt_d          # pre-scale: tq*D ops, not tq*S
        k = k_ref[...]
        # q @ k^T without materializing a transpose: contract the last dims.
        logits = mask_ref[...] + lax.dot_general(
            q, k, (((1,), (1,)), ((), ())),
            preferred_element_type=jnp.float32)          # (tq, S), f32
        m = jnp.max(logits, axis=-1, keepdims=True)
        p = jnp.exp(logits - m)
        # Exact normalization: `scores` is a module output, so match F.softmax
        # instead of using pl.reciprocal(approx=True).
        p = p / jnp.sum(p, axis=-1, keepdims=True)
        scores = p * pad_ref[...]            # padding applied post-softmax
        sc_ref[...] = scores.astype(sc_ref.dtype)
        # NOTE: V_x == K_x in the reference module, so attend over k.
        out_ref[...] = jnp.dot(scores.astype(k.dtype), k,
                               preferred_element_type=jnp.float32
                               ).astype(out_ref.dtype)

    return attn_kernel


def _attention(q, k, attn_mask, pad_mask, n_head):
    """q, k: (B, H, S, D); attn_mask: (1, 1, S, S); pad_mask: (B, 1, 1, S)."""
    B, H, S, D = q.shape
    tq = _pick_sublane_tile(S, cap=256)      # query-row tile
    grid = (B, H, S // tq)

    q_spec = pl.BlockSpec((None, None, tq, D), lambda b, h, i: (b, h, i, 0))
    k_spec = pl.BlockSpec((None, None, S, D), lambda b, h, i: (b, h, 0, 0))
    mask_spec = pl.BlockSpec((None, None, tq, S), lambda b, h, i: (0, 0, i, 0))
    pad_spec = pl.BlockSpec((None, None, 1, S), lambda b, h, i: (b, 0, 0, 0))
    out_spec = pl.BlockSpec((None, None, tq, D), lambda b, h, i: (b, h, i, 0))
    sc_spec = pl.BlockSpec((None, None, tq, S), lambda b, h, i: (b, h, i, 0))

    isz = q.dtype.itemsize
    blk_bytes = ((tq * D + S * D) * isz        # q, k blocks
                 + (tq * S + S) * 4            # mask, pad blocks
                 + tq * D * 4 + tq * S * 4)    # attended, scores blocks
    params = pltpu.CompilerParams(
        dimension_semantics=("parallel", "parallel", "parallel"),
        vmem_limit_bytes=_vmem_limit(blk_bytes),
    )

    # NOTE: the full (B, H, S, S) f32 scores writeback is required by the
    # reference semantics and is the HBM roofline for realistic S.
    return pl.pallas_call(
        _make_attn_kernel(D),
        grid=grid,
        in_specs=[q_spec, k_spec, mask_spec, pad_spec],
        out_specs=(out_spec, sc_spec),
        out_shape=(
            jax.ShapeDtypeStruct((B, H, S, D), jnp.float32),
            jax.ShapeDtypeStruct((B, H, S, S), jnp.float32),
        ),
        compiler_params=params,
    )(q, k, attn_mask, pad_mask)


# -------------------------------- full forward ---------------------------------


def multi_head_attention(x, attention_mask, padding_mask, params, n_head,
                         *, mxu_dtype=None):
    """Forward pass matching MultiHeadAttention.forward (eval mode).

    mxu_dtype=jnp.bfloat16 feeds bf16 operands to every MXU matmul (f32
    accumulation, f32 softmax) for ~2-3x MXU throughput and half the HBM
    traffic on weights/activations; the default (None) keeps full f32 parity
    with the PyTorch reference numerics.
    """
    B, S, HD = x.shape
    D = HD // n_head
    x2d = x.reshape(B * S, HD)                       # contiguous reshape (free)

    # Fused Q|K projection: one (Cin, 2*HD) weight -> one (B*S, 2*HD) slab.
    # (V deliberately reuses the K projection, exactly as the reference does.)
    w_qk = jnp.concatenate([params["Wq"].T, params["Wk"].T], axis=1)
    b_qk = jnp.concatenate([params["bq"], params["bk"]])
    qk2d = linear(x2d, w_qk, b_qk, mxu_dtype=mxu_dtype)          # (B*S, 2*HD)

    # Lane-contiguous per-head layout for the attention kernel: (B, H, S, D).
    qk = qk2d.reshape(B, S, 2, n_head, D).transpose(2, 0, 3, 1, 4)
    q, k = qk[0], qk[1]
    if mxu_dtype is not None:
        q = q.astype(mxu_dtype)
        k = k.astype(mxu_dtype)
    # TODO(synk): the Q/K projection could write (B, H, S, D) directly via its
    # out_spec index_map (tn = D) to skip this XLA transpose; kept separate so
    # the projection keeps large MXU N-tiles.

    # Masks in their native shapes (no (B, H, S, S) broadcast in HBM).
    attn_mask = jnp.broadcast_to(attention_mask.astype(jnp.float32), (1, 1, S, S))
    pad_mask = jnp.broadcast_to(padding_mask.astype(jnp.float32), (B, 1, 1, S))

    attended, scores = _attention(q, k, attn_mask, pad_mask, n_head)

    # (B, H, S, D) -> (B, S, H*D), same as .permute(0,2,1,3).contiguous().view().
    attended2d = attended.transpose(0, 2, 1, 3).reshape(B * S, HD)
    # TODO(synk): out_dropout omitted -- nn.Dropout is identity in eval mode.
    out = linear(attended2d, params["Wo"].T, params["bo"], mxu_dtype=mxu_dtype)
    return out.reshape(B, S, HD), scores


# ---------------------------------- example ------------------------------------


def _init_params(key, n_hidden):
    """Deterministic nn.Linear-style init: U(-1/sqrt(fan_in), 1/sqrt(fan_in))."""
    ks = jax.random.split(key, 8)
    bound = 1.0 / math.sqrt(n_hidden)

    def u(k, shape):
        return jax.random.uniform(k, shape, minval=-bound, maxval=bound,
                                  dtype=jnp.float32)

    return {
        "Wq": u(ks[0], (n_hidden, n_hidden)), "bq": u(ks[1], (n_hidden,)),
        "Wk": u(ks[2], (n_hidden, n_hidden)), "bk": u(ks[3], (n_hidden,)),
        # V weights exist in the module but are unused by forward.
        "Wv": u(ks[4], (n_hidden, n_hidden)), "bv": u(ks[5], (n_hidden,)),
        "Wo": u(ks[6], (n_hidden, n_hidden)), "bo": u(ks[7], (n_hidden,)),
    }


if __name__ == "__main__":
    B, S, n_hidden, n_head = 2, 8, 32, 4

    key = jax.random.PRNGKey(0)
    kx, kp = jax.random.split(key, 2)

    x = jax.random.normal(kx, (B, S, n_hidden), dtype=jnp.float32)
    params = _init_params(kp, n_hidden)

    # Additive attention mask (0 = keep, -1e9 = masked), causal example.
    causal = jnp.tril(jnp.ones((S, S), dtype=jnp.float32))
    attention_mask = jnp.where(causal > 0, 0.0, -1e9)[None, None, :, :]  # (1,1,S,S)
    # Multiplicative padding mask: last position of batch 1 is padded.
    padding = jnp.ones((B, 1, 1, S), dtype=jnp.float32)
    padding = padding.at[1, 0, 0, -1].set(0.0)

    out, scores = multi_head_attention(x, attention_mask, padding, params, n_head)
    jax.block_until_ready((out, scores))

    assert out.shape == (B, S, n_hidden)
    assert scores.shape == (B, n_head, S, S)
    assert bool(jnp.all(jnp.isfinite(out))) and bool(jnp.all(jnp.isfinite(scores)))
    print("KERNEL_OK")
</pallas_src>

<mosaic_0001>
module attributes {stable_mosaic.version = 11 : i64} {
  func.func @_linear_kernel(%arg0: i32, %arg1: i32, %arg2: i32, %arg3: memref<16x32xf32, #tpu.memory_space<vmem>>, %arg4: memref<32x64xf32, #tpu.memory_space<vmem>>, %arg5: memref<1x64xf32, #tpu.memory_space<vmem>>, %arg6: memref<16x64xf32, #tpu.memory_space<vmem>>, %arg7: memref<16x64xf32, #tpu.memory_space<vmem>>) attributes {dimension_semantics = [#tpu.dimension_semantics<parallel>, #tpu.dimension_semantics<parallel>, #tpu.dimension_semantics<arbitrary>], iteration_bounds = array<i64: 1, 1, 1>, scalar_prefetch = 0 : i64, scratch_operands = 1 : i64, tpu.core_type = #tpu.core_type<tc>, window_params = [{transform_indices = @transform_0, window_bounds = array<i64: 16, 32>}, {transform_indices = @transform_1, window_bounds = array<i64: 32, 64>}, {transform_indices = @transform_2, window_bounds = array<i64: 1, 64>}, {transform_indices = @transform_3, window_bounds = array<i64: 16, 64>}]} {
    %c0_i32 = arith.constant 0 : i32
    %0 = arith.cmpi eq, %arg2, %c0_i32 : i32
    %1 = arith.extui %0 : i1 to i32
    %c0_i32_0 = arith.constant 0 : i32
    %2 = arith.cmpi ne, %1, %c0_i32_0 : i32
    scf.if %2 {
      %cst_10 = arith.constant 0.000000e+00 : f32
      %12 = vector.broadcast %cst_10 : f32 to vector<16x64xf32>
      %c0_11 = arith.constant 0 : index
      %c0_12 = arith.constant 0 : index
      %13 = vector.load %arg7[%c0_11, %c0_12] : memref<16x64xf32, #tpu.memory_space<vmem>>, vector<16x64xf32>
      tpu.vector_store %arg7[%c0_11, %c0_12], %12 {strides = array<i32>} : memref<16x64xf32, #tpu.memory_space<vmem>>, vector<16x64xf32>,
    } else {
    }
    %c0 = arith.constant 0 : index
    %c0_1 = arith.constant 0 : index
    %3 = vector.load %arg7[%c0, %c0_1] : memref<16x64xf32, #tpu.memory_space<vmem>>, vector<16x64xf32>
    %c0_2 = arith.constant 0 : index
    %c0_3 = arith.constant 0 : index
    %4 = vector.load %arg3[%c0_2, %c0_3] : memref<16x32xf32, #tpu.memory_space<vmem>>, vector<16x32xf32>
    %c0_4 = arith.constant 0 : index
    %c0_5 = arith.constant 0 : index
    %5 = vector.load %arg4[%c0_4, %c0_5] : memref<32x64xf32, #tpu.memory_space<vmem>>, vector<32x64xf32>
    %cst = arith.constant dense<0.000000e+00> : vector<16x64xf32>
    %6 = tpu.matmul %4, %5, %cst {dimension_numbers = #tpu.dot_dimension_numbers<[1], [0], [0], [1], [0, 0, 1, 1], [], []>} : vector<16x32xf32>, vector<32x64xf32>, vector<16x64xf32> -> vector<16x64xf32>
    %7 = arith.addf %3, %6 : vector<16x64xf32>
    %c0_6 = arith.constant 0 : index
    %c0_7 = arith.constant 0 : index
    %8 = vector.load %arg7[%c0_6, %c0_7] : memref<16x64xf32, #tpu.memory_space<vmem>>, vector<16x64xf32>
    tpu.vector_store %arg7[%c0_6, %c0_7], %7 {strides = array<i32>} : memref<16x64xf32, #tpu.memory_space<vmem>>, vector<16x64xf32>,
    %c0_i32_8 = arith.constant 0 : i32
    %9 = arith.cmpi eq, %arg2, %c0_i32_8 : i32
    %10 = arith.extui %9 : i1 to i32
    %c0_i32_9 = arith.constant 0 : i32
    %11 = arith.cmpi ne, %10, %c0_i32_9 : i32
    scf.if %11 {
      %c0_10 = arith.constant 0 : index
      %c0_11 = arith.constant 0 : index
      %12 = vector.load %arg7[%c0_10, %c0_11] : memref<16x64xf32, #tpu.memory_space<vmem>>, vector<16x64xf32>
      %c0_12 = arith.constant 0 : index
      %c0_13 = arith.constant 0 : index
      %13 = vector.load %arg5[%c0_12, %c0_13] : memref<1x64xf32, #tpu.memory_space<vmem>>, vector<1x64xf32>
      %14 = vector.broadcast %13 : vector<1x64xf32> to vector<16x64xf32>
      %15 = arith.addf %12, %14 : vector<16x64xf32>
      %c0_14 = arith.constant 0 : index
      %c0_15 = arith.constant 0 : index
      %16 = vector.load %arg6[%c0_14, %c0_15] : memref<16x64xf32, #tpu.memory_space<vmem>>, vector<16x64xf32>
      tpu.vector_store %arg6[%c0_14, %c0_15], %15 {strides = array<i32>} : memref<16x64xf32, #tpu.memory_space<vmem>>, vector<16x64xf32>,
    } else {
    }
    return
  }
  func.func @transform_0(%arg0: i32, %arg1: i32, %arg2: i32) -> (i32, i32) {
    %c0_i32 = arith.constant 0 : i32
    return %arg0, %arg2 : i32, i32
  }
  func.func @transform_1(%arg0: i32, %arg1: i32, %arg2: i32) -> (i32, i32) {
    %c0_i32 = arith.constant 0 : i32
    return %arg2, %arg1 : i32, i32
  }
  func.func @transform_2(%arg0: i32, %arg1: i32, %arg2: i32) -> (i32, i32) {
    %c0_i32 = arith.constant 0 : i32
    %c0_i32_0 = arith.constant 0 : i32
    return %c0_i32, %arg1 : i32, i32
  }
  func.func @transform_3(%arg0: i32, %arg1: i32, %arg2: i32) -> (i32, i32) {
    %c0_i32 = arith.constant 0 : i32
    return %arg0, %arg1 : i32, i32
  }
}

</mosaic_0001>

<bundles_post_ra>
// kernel: tpu_custom_call.1
= control target key start
LH: loop header
LB: loop body
LE: loop exit
PB: predicated region body
PF: predicated region fallthrough
CT: control target
= control target key end

     0   :  { %8 = vsyncpa [#allocation4], 0  ;;  %s274_s0 = inlined_call_operand.hbm [shape: f32[16,32], index: 0, kind: input, shape index: {}]   ;;  %s275_s1 = inlined_call_operand.hbm [shape: f32[32,64], index: 1, kind: input, shape index: {}]   ;;  %s276_s2 = inlined_call_operand.vmem [shape: f32[1,64], index: 2, kind: input, shape index: {}]   ;;  %s277_s3 = inlined_call_operand.hbm [shape: f32[16,64], index: 3, kind: output, shape index: {}]  }
   0x1   :  { %9 = vsyncpa [#allocation7], 0 }
   0x2   :  { %10 = vsyncpa [#allocation5], 0  ;;  %s15_s14 = sshll.u32 %s274_s0, 4  ;;  %s221_s15 = smov [#allocation3]   ;;  %s16_s14 = int_to_ptr.hbm [resolvable:$true] %s15_s14 }
   0x3   :  { %s17_s16 = sshll.u32 %s221_s15, 4  ;;  %s28_s19 = sshll.u32 %s275_s1, 4  ;;  %s18_s16 = int_to_ptr.vmem [resolvable:$true] %s17_s16  ;;  %s29_s19 = int_to_ptr.hbm [resolvable:$true] %s28_s19 }
   0x4   :  { %s222_s20 = smov 128   ;;  %s223_s21 = smov 8  }
   0x5   :  { %23 = dma.hbm_to_vmem [thread:$0]  %s16_s14, 256, %s18_s16, [#allocation4], %s222_s20, %s222_s20, %s223_s21  }
   0x6   :  { %s224_s22 = smov [#allocation6]  }
   0x7   :  { %s30_s23 = sshll.u32 %s224_s22, 4  ;;  %s31_s23 = int_to_ptr.vmem [resolvable:$true] %s30_s23 }
   0x8   :  { %36 = dma.hbm_to_vmem [thread:$0]  %s29_s19, 512, %s31_s23, [#allocation7], %s222_s20, %s222_s20, %s223_s21  }
   0x9   :  { %215 = dma.done.wait [#allocation4], 256  }
   0xa   :  { %216 = vsyncadd [#allocation4], 4294967040 }
   0xb   :  { %217 = dma.done.wait [#allocation7], 512  }
   0xc   :  { %218 = vsyncadd [#allocation7], 4294966784  ;;  %vm51_vm0 = vcmask 523264   ;;  %v225_v0 = vmov 0.0   ;;  %v61_v1 = vld [vmem:[#allocation6 + $0x18] sm:$0xff]  ;;  %v60_v2 = vld [vmem:[#allocation6 + $0x10] sm:$0xff] }
   0xd   :  { %52 = vst.msk [vmem:[#allocation2] sm:$0xff] %vm51_vm0, %v225_v0  ;;  %81 = vmatpush.msra.mxu0 %v61_v1  ;;  %132 = vmatpush.msra.mxu1 %v61_v1  ;;  %v59_v3 = vld [vmem:[#allocation6 + $0x8] sm:$0xff]  ;;  %v58_v4 = vld [vmem:[#allocation6] sm:$0xff]  ;;  %v56_v5 = vld [vmem:[#allocation3] sm:$0xff]  ;;  %vm62_vm1 = vcmask 261120   ;;  %s226_s24 = smov [#allocation8]  }
   0xe   :  { %53 = vst.msk [vmem:[#allocation2 + $0x8] sm:$0xff] %vm51_vm0, %v225_v0  ;;  %v57_v6 = vld [vmem:[#allocation3 + $0x8] sm:$0xff]  ;;  %v142_v13 = vld [vmem:[%s276_s2] ss:$0 sm:$0xff]  ;;  %s114_s25 = sshll.u32 %s226_s24, 4  ;;  %s116_s28 = sshll.u32 %s277_s3, 4  ;;  %s115_s25 = int_to_ptr.vmem [resolvable:$true] %s114_s25  ;;  %s117_s28 = int_to_ptr.hbm [resolvable:$true] %s116_s28 }
   0xf   :  { %82 = vmatpush.msra.mxu0 %v60_v2  ;;  %133 = vmatpush.msra.mxu1 %v60_v2 }
  0x11   :  { %83 = vmatpush.msra.mxu0 %v59_v3  ;;  %134 = vmatpush.msra.mxu1 %v59_v3 }
  0x13   :  { %84 = vmatpush.msra.mxu0 %v58_v4  ;;  %135 = vmatpush.msra.mxu1 %v58_v4 }
  0x14   :  { %130 = vmatmul.msk.f32.vlgmr.msra.gmra.mxu0 %vm62_vm1, %v56_v5  ;;  %131 = vmatmul.msk.f32.vlgmr.msra.gmra.mxu1 %vm62_vm1, %v57_v6  ;;  %v54_v7 = vld [vmem:[#allocation2] sm:$0xff] }
  0x15   :  { %v55_v8 = vld [vmem:[#allocation2 + $0x8] sm:$0xff] }
  0x91   :  { %v86_v9 = vpop.f32.mrf.mxu0  ;;  %v89_v10 = vpop.f32.mrf.mxu1 }
  0x92   :  { %v92_v11 = vadd.f32 %v86_v9, %v54_v7  ;;  %v93_v12 = vadd.f32 %v89_v10, %v55_v8 }
  0x94   :  { %95 = vst.msk [vmem:[#allocation2] sm:$0xff] %vm51_vm0, %v92_v11 }
  0x95   :  { %96 = vst.msk [vmem:[#allocation2 + $0x8] sm:$0xff] %vm51_vm0, %v93_v12 }
  0x9b   :  { %v100_v14 = vld [vmem:[#allocation2] sm:$0xff] }
  0x9c   :  { %v101_v15 = vld [vmem:[#allocation2 + $0x8] sm:$0xff]  ;;  %v106_v16 = vadd.f32 %v142_v13, %v100_v14 }
  0x9d   :  { %v107_v17 = vadd.f32 %v142_v13, %v101_v15 }
  0x9e   :  { %108 = vst.msk [vmem:[#allocation8] sm:$0xff] %vm51_vm0, %v106_v16 }
  0x9f   :  { %109 = vst.msk [vmem:[#allocation8 + $0x8] sm:$0xff] %vm51_vm0, %v107_v17 }
  0xa0   :  { %122 = dma.vmem_to_hbm [thread:$0]  %s115_s25, 256, %s117_s28, [#allocation5], %s222_s20, %s222_s20, %s223_s21  }
  0xa1   :  { %219 = dma.done.wait [#allocation5], 256  }
  0xa2   :  { %220 = vsyncadd [#allocation5], 4294967040 }
  0xa3   :  { %127 = vsyncpa [#allocation4], 1 }
  0xa4   :  { %128 = vsyncpa [#allocation7], 1 }
  0xa5   :  { %129 = vsyncpa [#allocation5], 1 }

</bundles_post_ra>
